<compile_context>
chip_gen: v7x
topology: tpu7x:2x2x1
jax: 0.10.0
libtpu: 0.0.40
codegen_flags: <defaults>
</compile_context>

<pallas_src>
import functools

import jax
import jax.numpy as jnp
from jax import lax
from jax.experimental import pallas as pl
from jax.experimental.pallas import tpu as pltpu


def _residual_block_kernel(x_ref, w1_ref, s1_ref, b1_ref,
                           w2_ref, s2_ref, b2_ref, o_ref, *, width):
    # x_ref / o_ref : (1, C, H*W)   one batch element, NCHW with HW flattened
    # w1_ref        : (Ch, C)       1x1 conv weight (out-major)
    # w2_ref        : (9, C, Ch)    3x3 conv weight, tap-major (dy*3+dx)
    # s1/b1, s2/b2  : (Ch,1),(C,1)  folded BatchNorm scale / bias
    HW = x_ref.shape[2]
    x = x_ref[0]                                                  # (C, HW)

    # ---- BasicConv #1: 1x1 conv (C -> Ch) + BN + LeakyReLU(0.1) ------------
    h = jnp.dot(w1_ref[...], x, preferred_element_type=jnp.float32)  # (Ch, HW)
    h = h * s1_ref[...] + b1_ref[...]
    h = jnp.where(h > 0, h, 0.1 * h)

    # ---- border masks: small (1, HW) lane vectors, broadcast over channels -
    pos = lax.broadcasted_iota(jnp.int32, (1, HW), 1)
    col = pos % width
    row_ok = (pos >= width, None, pos < (HW - width))     # dy = 0, 1, 2
    col_ok = (col != 0, None, col != (width - 1))         # dx = 0, 1, 2

    # ---- BasicConv #2: 3x3 conv (Ch -> C, pad=1) as 9 plane matmuls --------
    # Shifted taps via pltpu.roll (lane rotation on the XLU) of the live
    # center slab; masks zero the taps that fall outside the image.
    acc = None
    for dy in range(3):
        for dx in range(3):
            s = (dy - 1) * width + (dx - 1)               # flat-index shift
            tap = h if s == 0 else pltpu.roll(h, shift=(-s) % HW, axis=1)
            if row_ok[dy] is not None and col_ok[dx] is not None:
                mask = jnp.logical_and(row_ok[dy], col_ok[dx])
            elif row_ok[dy] is not None:
                mask = row_ok[dy]
            else:
                mask = col_ok[dx]
            if mask is not None:
                tap = jnp.where(mask, tap, 0.0)
            d = jnp.dot(w2_ref[dy * 3 + dx], tap,
                        preferred_element_type=jnp.float32)          # (C, HW)
            acc = d if acc is None else acc + d

    y = acc * s2_ref[...] + b2_ref[...]
    y = jnp.where(y > 0, y, 0.1 * y)

    # Residual add + single lane-dense output store (last dim = HW >= 128).
    o_ref[0] = (x.astype(jnp.float32) + y).astype(o_ref.dtype)


def residual_block(x_nchw, w1, s1, b1, w2, s2, b2):
    """x: (N,C,H,W).  w1: (C, Ch) 1x1 weight (in-major); w2: (3,3,Ch,C) HWIO
    (both equivalent to PyTorch's (Cout,Cin,kh,kw) up to fixed transposition).
    s*/b*: folded eval-mode BatchNorm scale/bias per channel."""
    N, C, H, W = x_nchw.shape
    Ch = w1.shape[1]
    HW = H * W

    # Free reshape only -- no NCHW<->NHWC transpose / extra HBM pass.
    x = x_nchw.reshape(N, C, HW)

    # Tiny weight-side relayouts (negligible traffic, done once).
    w1k = jnp.transpose(w1, (1, 0))                            # (Ch, C)
    w2k = jnp.transpose(w2, (0, 1, 3, 2)).reshape(9, C, Ch)    # tap-major
    s1k = jnp.asarray(s1, jnp.float32).reshape(Ch, 1)
    b1k = jnp.asarray(b1, jnp.float32).reshape(Ch, 1)
    s2k = jnp.asarray(s2, jnp.float32).reshape(C, 1)
    b2k = jnp.asarray(b2, jnp.float32).reshape(C, 1)

    kernel = functools.partial(_residual_block_kernel, width=W)

    out = pl.pallas_call(
        kernel,
        out_shape=jax.ShapeDtypeStruct((N, C, HW), x.dtype),
        grid_spec=pltpu.PrefetchScalarGridSpec(
            num_scalar_prefetch=0,
            grid=(N,),
            in_specs=[
                pl.BlockSpec((1, C, HW), lambda n: (n, 0, 0)),
                pl.BlockSpec((Ch, C), lambda n: (0, 0)),
                pl.BlockSpec((Ch, 1), lambda n: (0, 0)),
                pl.BlockSpec((Ch, 1), lambda n: (0, 0)),
                pl.BlockSpec((9, C, Ch), lambda n: (0, 0, 0)),
                pl.BlockSpec((C, 1), lambda n: (0, 0)),
                pl.BlockSpec((C, 1), lambda n: (0, 0)),
            ],
            out_specs=pl.BlockSpec((1, C, HW), lambda n: (n, 0, 0)),
        ),
        compiler_params=pltpu.CompilerParams(
            dimension_semantics=("parallel",),
            vmem_limit_bytes=32 * 1024 * 1024),
    )(x, w1k, s1k, b1k, w2k, s2k, b2k)

    return out.reshape(N, C, H, W)


def reference_forward(x_nchw, w1, s1, b1, w2, s2, b2):
    """Pure-JAX reference (same folded-BN eval-mode semantics)."""
    x = jnp.transpose(x_nchw, (0, 2, 3, 1))      # reference only
    C, Ch = w1.shape
    h = lax.conv_general_dilated(
        x, w1.reshape(1, 1, C, Ch), (1, 1), 'VALID',
        dimension_numbers=('NHWC', 'HWIO', 'NHWC'),
        precision=lax.Precision.HIGHEST)
    h = h * s1 + b1
    h = jnp.where(h > 0, h, 0.1 * h)
    y = lax.conv_general_dilated(
        h, w2, (1, 1), ((1, 1), (1, 1)),
        dimension_numbers=('NHWC', 'HWIO', 'NHWC'),
        precision=lax.Precision.HIGHEST)
    y = y * s2 + b2
    y = jnp.where(y > 0, y, 0.1 * y)
    return jnp.transpose(x + y, (0, 3, 1, 2))


if __name__ == "__main__":
    N, C, H, W = 2, 8, 16, 16
    Ch = C // 2
    key = jax.random.PRNGKey(0)
    ks = jax.random.split(key, 11)

    x = jax.random.normal(ks[0], (N, C, H, W), jnp.float32)

    # Conv weights (w1: (Cin, Cout); w2: HWIO (kh, kw, Cin, Cout)).
    w1 = 0.3 * jax.random.normal(ks[1], (C, Ch), jnp.float32)
    w2 = 0.2 * jax.random.normal(ks[2], (3, 3, Ch, C), jnp.float32)

    eps = 1e-5
    # BatchNorm #1 (Ch channels), folded to per-channel scale/bias (eval mode)
    g1 = 1.0 + 0.1 * jax.random.normal(ks[3], (Ch,), jnp.float32)
    be1 = 0.1 * jax.random.normal(ks[4], (Ch,), jnp.float32)
    m1 = 0.1 * jax.random.normal(ks[5], (Ch,), jnp.float32)
    v1 = jax.random.uniform(ks[6], (Ch,), jnp.float32, 0.5, 1.5)
    s1 = g1 / jnp.sqrt(v1 + eps)
    b1 = be1 - m1 * g1 / jnp.sqrt(v1 + eps)

    # BatchNorm #2 (C channels)
    g2 = 1.0 + 0.1 * jax.random.normal(ks[7], (C,), jnp.float32)
    be2 = 0.1 * jax.random.normal(ks[8], (C,), jnp.float32)
    m2 = 0.1 * jax.random.normal(ks[9], (C,), jnp.float32)
    v2 = jax.random.uniform(ks[10], (C,), jnp.float32, 0.5, 1.5)
    s2 = g2 / jnp.sqrt(v2 + eps)
    b2 = be2 - m2 * g2 / jnp.sqrt(v2 + eps)

    out = residual_block(x, w1, s1, b1, w2, s2, b2)
    out = jax.block_until_ready(out)

    ref = reference_forward(x, w1, s1, b1, w2, s2, b2)
    assert out.shape == (N, C, H, W)
    max_err = float(jnp.max(jnp.abs(out - ref)))
    assert jnp.allclose(out, ref, atol=1e-3, rtol=1e-3), f"max_err={max_err}"
    print("KERNEL_OK")
</pallas_src>

<mosaic_0001>
module attributes {stable_mosaic.version = 11 : i64} {
  func.func @_residual_block_kernel(%arg0: i32, %arg1: memref<1x8x256xf32, #tpu.memory_space<vmem>>, %arg2: memref<4x8xf32, #tpu.memory_space<vmem>>, %arg3: memref<4x1xf32, #tpu.memory_space<vmem>>, %arg4: memref<4x1xf32, #tpu.memory_space<vmem>>, %arg5: memref<9x8x4xf32, #tpu.memory_space<vmem>>, %arg6: memref<8x1xf32, #tpu.memory_space<vmem>>, %arg7: memref<8x1xf32, #tpu.memory_space<vmem>>, %arg8: memref<1x8x256xf32, #tpu.memory_space<vmem>>) attributes {dimension_semantics = [#tpu.dimension_semantics<parallel>], iteration_bounds = array<i64: 2>, scalar_prefetch = 0 : i64, scratch_operands = 0 : i64, tpu.core_type = #tpu.core_type<tc>, window_params = [{transform_indices = @transform_0, window_bounds = array<i64: 1, 8, 256>}, {pipeline_mode = #tpu.pipeline_mode<synchronous>, transform_indices = @transform_1, window_bounds = array<i64: 4, 8>}, {pipeline_mode = #tpu.pipeline_mode<synchronous>, transform_indices = @transform_2, window_bounds = array<i64: 4, 1>}, {pipeline_mode = #tpu.pipeline_mode<synchronous>, transform_indices = @transform_3, window_bounds = array<i64: 4, 1>}, {pipeline_mode = #tpu.pipeline_mode<synchronous>, transform_indices = @transform_4, window_bounds = array<i64: 9, 8, 4>}, {pipeline_mode = #tpu.pipeline_mode<synchronous>, transform_indices = @transform_5, window_bounds = array<i64: 8, 1>}, {pipeline_mode = #tpu.pipeline_mode<synchronous>, transform_indices = @transform_6, window_bounds = array<i64: 8, 1>}, {transform_indices = @transform_7, window_bounds = array<i64: 1, 8, 256>}]} {
    %c0 = arith.constant 0 : index
    %c0_0 = arith.constant 0 : index
    %c0_1 = arith.constant 0 : index
    %0 = vector.load %arg1[%c0, %c0_0, %c0_1] : memref<1x8x256xf32, #tpu.memory_space<vmem>>, vector<1x8x256xf32>
    %1 = vector.shape_cast %0 : vector<1x8x256xf32> to vector<8x256xf32>
    %c0_2 = arith.constant 0 : index
    %c0_3 = arith.constant 0 : index
    %2 = vector.load %arg2[%c0_2, %c0_3] : memref<4x8xf32, #tpu.memory_space<vmem>>, vector<4x8xf32>
    %cst = arith.constant dense<0.000000e+00> : vector<4x256xf32>
    %3 = tpu.matmul %2, %1, %cst {dimension_numbers = #tpu.dot_dimension_numbers<[1], [0], [0], [1], [0, 0, 1, 1], [], []>} : vector<4x8xf32>, vector<8x256xf32>, vector<4x256xf32> -> vector<4x256xf32>
    %c0_4 = arith.constant 0 : index
    %c0_5 = arith.constant 0 : index
    %4 = vector.load %arg3[%c0_4, %c0_5] : memref<4x1xf32, #tpu.memory_space<vmem>>, vector<4x1xf32>
    %5 = vector.broadcast %4 : vector<4x1xf32> to vector<4x256xf32>
    %6 = arith.mulf %3, %5 : vector<4x256xf32>
    %c0_6 = arith.constant 0 : index
    %c0_7 = arith.constant 0 : index
    %7 = vector.load %arg4[%c0_6, %c0_7] : memref<4x1xf32, #tpu.memory_space<vmem>>, vector<4x1xf32>
    %8 = vector.broadcast %7 : vector<4x1xf32> to vector<4x256xf32>
    %9 = arith.addf %6, %8 : vector<4x256xf32>
    %cst_8 = arith.constant 0.000000e+00 : f32
    %10 = vector.broadcast %cst_8 : f32 to vector<4x256xf32>
    %11 = arith.cmpf ogt, %9, %10 : vector<4x256xf32>
    %cst_9 = arith.constant 1.000000e-01 : f32
    %12 = vector.broadcast %cst_9 : f32 to vector<4x256xf32>
    %13 = arith.mulf %12, %9 : vector<4x256xf32>
    %14 = arith.select %11, %9, %13 : vector<4x256xi1>, vector<4x256xf32>
    %15 = tpu.iota {dimensions = array<i32: 1>} : vector<1x256xi32>
    %c16_i32 = arith.constant 16 : i32
    %c0_i32 = arith.constant 0 : i32
    %16 = arith.cmpi eq, %c16_i32, %c0_i32 : i32
    %c1_i32 = arith.constant 1 : i32
    %17 = arith.select %16, %c1_i32, %c16_i32 : i32
    %18 = vector.broadcast %17 : i32 to vector<1x256xi32>
    %19 = arith.remsi %15, %18 : vector<1x256xi32>
    %c0_i32_10 = arith.constant 0 : i32
    %20 = vector.broadcast %c0_i32_10 : i32 to vector<1x256xi32>
    %21 = arith.cmpi ne, %19, %20 : vector<1x256xi32>
    %c0_i32_11 = arith.constant 0 : i32
    %22 = vector.broadcast %c0_i32_11 : i32 to vector<1x256xi32>
    %23 = arith.cmpi slt, %19, %22 : vector<1x256xi32>
    %c0_i32_12 = arith.constant 0 : i32
    %24 = arith.cmpi slt, %17, %c0_i32_12 : i32
    %25 = vector.broadcast %24 : i1 to vector<1x256xi1>
    %26 = vector.broadcast %25 : vector<1x256xi1> to vector<1x256xi1>
    %27 = arith.xori %23, %26 : vector<1x256xi1>
    %28 = arith.andi %27, %21 : vector<1x256xi1>
    %29 = vector.broadcast %17 : i32 to vector<1x256xi32>
    %30 = arith.addi %19, %29 : vector<1x256xi32>
    %31 = arith.select %28, %30, %19 : vector<1x256xi1>, vector<1x256xi32>
    %c16_i32_13 = arith.constant 16 : i32
    %32 = vector.broadcast %c16_i32_13 : i32 to vector<1x256xi32>
    %33 = arith.cmpi sge, %15, %32 : vector<1x256xi32>
    %c240_i32 = arith.constant 240 : i32
    %34 = vector.broadcast %c240_i32 : i32 to vector<1x256xi32>
    %35 = arith.cmpi slt, %15, %34 : vector<1x256xi32>
    %c0_i32_14 = arith.constant 0 : i32
    %36 = vector.broadcast %c0_i32_14 : i32 to vector<1x256xi32>
    %37 = arith.cmpi ne, %31, %36 : vector<1x256xi32>
    %c15_i32 = arith.constant 15 : i32
    %38 = vector.broadcast %c15_i32 : i32 to vector<1x256xi32>
    %39 = arith.cmpi ne, %31, %38 : vector<1x256xi32>
    %c17_i32 = arith.constant 17 : i32
    %40 = tpu.dynamic_rotate %14 by %c17_i32 dim 1 : vector<4x256xf32>, i32 -> vector<4x256xf32>
    %41 = arith.andi %33, %37 : vector<1x256xi1>
    %cst_15 = arith.constant 0.000000e+00 : f32
    %42 = vector.shape_cast %41 : vector<1x256xi1> to vector<1x256xi1>
    %43 = vector.broadcast %42 : vector<1x256xi1> to vector<4x256xi1>
    %44 = vector.broadcast %cst_15 : f32 to vector<4x256xf32>
    %45 = arith.select %43, %40, %44 : vector<4x256xi1>, vector<4x256xf32>
    %c0_16 = arith.constant 0 : index
    %c0_17 = arith.constant 0 : index
    %c0_18 = arith.constant 0 : index
    %46 = vector.load %arg5[%c0_16, %c0_17, %c0_18] : memref<9x8x4xf32, #tpu.memory_space<vmem>>, vector<1x8x4xf32>
    %47 = vector.shape_cast %46 : vector<1x8x4xf32> to vector<8x4xf32>
    %cst_19 = arith.constant dense<0.000000e+00> : vector<8x256xf32>
    %48 = tpu.matmul %47, %45, %cst_19 {dimension_numbers = #tpu.dot_dimension_numbers<[1], [0], [0], [1], [0, 0, 1, 1], [], []>} : vector<8x4xf32>, vector<4x256xf32>, vector<8x256xf32> -> vector<8x256xf32>
    %c16_i32_20 = arith.constant 16 : i32
    %49 = tpu.dynamic_rotate %14 by %c16_i32_20 dim 1 : vector<4x256xf32>, i32 -> vector<4x256xf32>
    %cst_21 = arith.constant 0.000000e+00 : f32
    %50 = vector.shape_cast %33 : vector<1x256xi1> to vector<1x256xi1>
    %51 = vector.broadcast %50 : vector<1x256xi1> to vector<4x256xi1>
    %52 = vector.broadcast %cst_21 : f32 to vector<4x256xf32>
    %53 = arith.select %51, %49, %52 : vector<4x256xi1>, vector<4x256xf32>
    %c1 = arith.constant 1 : index
    %c0_22 = arith.constant 0 : index
    %c0_23 = arith.constant 0 : index
    %54 = vector.load %arg5[%c1, %c0_22, %c0_23] : memref<9x8x4xf32, #tpu.memory_space<vmem>>, vector<1x8x4xf32>
    %55 = vector.shape_cast %54 : vector<1x8x4xf32> to vector<8x4xf32>
    %cst_24 = arith.constant dense<0.000000e+00> : vector<8x256xf32>
    %56 = tpu.matmul %55, %53, %cst_24 {dimension_numbers = #tpu.dot_dimension_numbers<[1], [0], [0], [1], [0, 0, 1, 1], [], []>} : vector<8x4xf32>, vector<4x256xf32>, vector<8x256xf32> -> vector<8x256xf32>
    %57 = arith.addf %48, %56 : vector<8x256xf32>
    %c15_i32_25 = arith.constant 15 : i32
    %58 = tpu.dynamic_rotate %14 by %c15_i32_25 dim 1 : vector<4x256xf32>, i32 -> vector<4x256xf32>
    %59 = arith.andi %33, %39 : vector<1x256xi1>
    %cst_26 = arith.constant 0.000000e+00 : f32
    %60 = vector.shape_cast %59 : vector<1x256xi1> to vector<1x256xi1>
    %61 = vector.broadcast %60 : vector<1x256xi1> to vector<4x256xi1>
    %62 = vector.broadcast %cst_26 : f32 to vector<4x256xf32>
    %63 = arith.select %61, %58, %62 : vector<4x256xi1>, vector<4x256xf32>
    %c2 = arith.constant 2 : index
    %c0_27 = arith.constant 0 : index
    %c0_28 = arith.constant 0 : index
    %64 = vector.load %arg5[%c2, %c0_27, %c0_28] : memref<9x8x4xf32, #tpu.memory_space<vmem>>, vector<1x8x4xf32>
    %65 = vector.shape_cast %64 : vector<1x8x4xf32> to vector<8x4xf32>
    %cst_29 = arith.constant dense<0.000000e+00> : vector<8x256xf32>
    %66 = tpu.matmul %65, %63, %cst_29 {dimension_numbers = #tpu.dot_dimension_numbers<[1], [0], [0], [1], [0, 0, 1, 1], [], []>} : vector<8x4xf32>, vector<4x256xf32>, vector<8x256xf32> -> vector<8x256xf32>
    %67 = arith.addf %57, %66 : vector<8x256xf32>
    %c1_i32_30 = arith.constant 1 : i32
    %68 = tpu.dynamic_rotate %14 by %c1_i32_30 dim 1 : vector<4x256xf32>, i32 -> vector<4x256xf32>
    %cst_31 = arith.constant 0.000000e+00 : f32
    %69 = vector.shape_cast %37 : vector<1x256xi1> to vector<1x256xi1>
    %70 = vector.broadcast %69 : vector<1x256xi1> to vector<4x256xi1>
    %71 = vector.broadcast %cst_31 : f32 to vector<4x256xf32>
    %72 = arith.select %70, %68, %71 : vector<4x256xi1>, vector<4x256xf32>
    %c3 = arith.constant 3 : index
    %c0_32 = arith.constant 0 : index
    %c0_33 = arith.constant 0 : index
    %73 = vector.load %arg5[%c3, %c0_32, %c0_33] : memref<9x8x4xf32, #tpu.memory_space<vmem>>, vector<1x8x4xf32>
    %74 = vector.shape_cast %73 : vector<1x8x4xf32> to vector<8x4xf32>
    %cst_34 = arith.constant dense<0.000000e+00> : vector<8x256xf32>
    %75 = tpu.matmul %74, %72, %cst_34 {dimension_numbers = #tpu.dot_dimension_numbers<[1], [0], [0], [1], [0, 0, 1, 1], [], []>} : vector<8x4xf32>, vector<4x256xf32>, vector<8x256xf32> -> vector<8x256xf32>
    %76 = arith.addf %67, %75 : vector<8x256xf32>
    %c4 = arith.constant 4 : index
    %c0_35 = arith.constant 0 : index
    %c0_36 = arith.constant 0 : index
    %77 = vector.load %arg5[%c4, %c0_35, %c0_36] : memref<9x8x4xf32, #tpu.memory_space<vmem>>, vector<1x8x4xf32>
    %78 = vector.shape_cast %77 : vector<1x8x4xf32> to vector<8x4xf32>
    %cst_37 = arith.constant dense<0.000000e+00> : vector<8x256xf32>
    %79 = tpu.matmul %78, %14, %cst_37 {dimension_numbers = #tpu.dot_dimension_numbers<[1], [0], [0], [1], [0, 0, 1, 1], [], []>} : vector<8x4xf32>, vector<4x256xf32>, vector<8x256xf32> -> vector<8x256xf32>
    %80 = arith.addf %76, %79 : vector<8x256xf32>
    %c255_i32 = arith.constant 255 : i32
    %81 = tpu.dynamic_rotate %14 by %c255_i32 dim 1 : vector<4x256xf32>, i32 -> vector<4x256xf32>
    %cst_38 = arith.constant 0.000000e+00 : f32
    %82 = vector.shape_cast %39 : vector<1x256xi1> to vector<1x256xi1>
    %83 = vector.broadcast %82 : vector<1x256xi1> to vector<4x256xi1>
    %84 = vector.broadcast %cst_38 : f32 to vector<4x256xf32>
    %85 = arith.select %83, %81, %84 : vector<4x256xi1>, vector<4x256xf32>
    %c5 = arith.constant 5 : index
    %c0_39 = arith.constant 0 : index
    %c0_40 = arith.constant 0 : index
    %86 = vector.load %arg5[%c5, %c0_39, %c0_40] : memref<9x8x4xf32, #tpu.memory_space<vmem>>, vector<1x8x4xf32>
    %87 = vector.shape_cast %86 : vector<1x8x4xf32> to vector<8x4xf32>
    %cst_41 = arith.constant dense<0.000000e+00> : vector<8x256xf32>
    %88 = tpu.matmul %87, %85, %cst_41 {dimension_numbers = #tpu.dot_dimension_numbers<[1], [0], [0], [1], [0, 0, 1, 1], [], []>} : vector<8x4xf32>, vector<4x256xf32>, vector<8x256xf32> -> vector<8x256xf32>
    %89 = arith.addf %80, %88 : vector<8x256xf32>
    %c241_i32 = arith.constant 241 : i32
    %90 = tpu.dynamic_rotate %14 by %c241_i32 dim 1 : vector<4x256xf32>, i32 -> vector<4x256xf32>
    %91 = arith.andi %35, %37 : vector<1x256xi1>
    %cst_42 = arith.constant 0.000000e+00 : f32
    %92 = vector.shape_cast %91 : vector<1x256xi1> to vector<1x256xi1>
    %93 = vector.broadcast %92 : vector<1x256xi1> to vector<4x256xi1>
    %94 = vector.broadcast %cst_42 : f32 to vector<4x256xf32>
    %95 = arith.select %93, %90, %94 : vector<4x256xi1>, vector<4x256xf32>
    %c6 = arith.constant 6 : index
    %c0_43 = arith.constant 0 : index
    %c0_44 = arith.constant 0 : index
    %96 = vector.load %arg5[%c6, %c0_43, %c0_44] : memref<9x8x4xf32, #tpu.memory_space<vmem>>, vector<1x8x4xf32>
    %97 = vector.shape_cast %96 : vector<1x8x4xf32> to vector<8x4xf32>
    %cst_45 = arith.constant dense<0.000000e+00> : vector<8x256xf32>
    %98 = tpu.matmul %97, %95, %cst_45 {dimension_numbers = #tpu.dot_dimension_numbers<[1], [0], [0], [1], [0, 0, 1, 1], [], []>} : vector<8x4xf32>, vector<4x256xf32>, vector<8x256xf32> -> vector<8x256xf32>
    %99 = arith.addf %89, %98 : vector<8x256xf32>
    %c240_i32_46 = arith.constant 240 : i32
    %100 = tpu.dynamic_rotate %14 by %c240_i32_46 dim 1 : vector<4x256xf32>, i32 -> vector<4x256xf32>
    %cst_47 = arith.constant 0.000000e+00 : f32
    %101 = vector.shape_cast %35 : vector<1x256xi1> to vector<1x256xi1>
    %102 = vector.broadcast %101 : vector<1x256xi1> to vector<4x256xi1>
    %103 = vector.broadcast %cst_47 : f32 to vector<4x256xf32>
    %104 = arith.select %102, %100, %103 : vector<4x256xi1>, vector<4x256xf32>
    %c7 = arith.constant 7 : index
    %c0_48 = arith.constant 0 : index
    %c0_49 = arith.constant 0 : index
    %105 = vector.load %arg5[%c7, %c0_48, %c0_49] : memref<9x8x4xf32, #tpu.memory_space<vmem>>, vector<1x8x4xf32>
    %106 = vector.shape_cast %105 : vector<1x8x4xf32> to vector<8x4xf32>
    %cst_50 = arith.constant dense<0.000000e+00> : vector<8x256xf32>
    %107 = tpu.matmul %106, %104, %cst_50 {dimension_numbers = #tpu.dot_dimension_numbers<[1], [0], [0], [1], [0, 0, 1, 1], [], []>} : vector<8x4xf32>, vector<4x256xf32>, vector<8x256xf32> -> vector<8x256xf32>
    %108 = arith.addf %99, %107 : vector<8x256xf32>
    %c239_i32 = arith.constant 239 : i32
    %109 = tpu.dynamic_rotate %14 by %c239_i32 dim 1 : vector<4x256xf32>, i32 -> vector<4x256xf32>
    %110 = arith.andi %35, %39 : vector<1x256xi1>
    %cst_51 = arith.constant 0.000000e+00 : f32
    %111 = vector.shape_cast %110 : vector<1x256xi1> to vector<1x256xi1>
    %112 = vector.broadcast %111 : vector<1x256xi1> to vector<4x256xi1>
    %113 = vector.broadcast %cst_51 : f32 to vector<4x256xf32>
    %114 = arith.select %112, %109, %113 : vector<4x256xi1>, vector<4x256xf32>
    %c8 = arith.constant 8 : index
    %c0_52 = arith.constant 0 : index
    %c0_53 = arith.constant 0 : index
    %115 = vector.load %arg5[%c8, %c0_52, %c0_53] : memref<9x8x4xf32, #tpu.memory_space<vmem>>, vector<1x8x4xf32>
    %116 = vector.shape_cast %115 : vector<1x8x4xf32> to vector<8x4xf32>
    %cst_54 = arith.constant dense<0.000000e+00> : vector<8x256xf32>
    %117 = tpu.matmul %116, %114, %cst_54 {dimension_numbers = #tpu.dot_dimension_numbers<[1], [0], [0], [1], [0, 0, 1, 1], [], []>} : vector<8x4xf32>, vector<4x256xf32>, vector<8x256xf32> -> vector<8x256xf32>
    %118 = arith.addf %108, %117 : vector<8x256xf32>
    %c0_55 = arith.constant 0 : index
    %c0_56 = arith.constant 0 : index
    %119 = vector.load %arg6[%c0_55, %c0_56] : memref<8x1xf32, #tpu.memory_space<vmem>>, vector<8x1xf32>
    %120 = vector.broadcast %119 : vector<8x1xf32> to vector<8x256xf32>
    %121 = arith.mulf %118, %120 : vector<8x256xf32>
    %c0_57 = arith.constant 0 : index
    %c0_58 = arith.constant 0 : index
    %122 = vector.load %arg7[%c0_57, %c0_58] : memref<8x1xf32, #tpu.memory_space<vmem>>, vector<8x1xf32>
    %123 = vector.broadcast %122 : vector<8x1xf32> to vector<8x256xf32>
    %124 = arith.addf %121, %123 : vector<8x256xf32>
    %cst_59 = arith.constant 0.000000e+00 : f32
    %125 = vector.broadcast %cst_59 : f32 to vector<8x256xf32>
    %126 = arith.cmpf ogt, %124, %125 : vector<8x256xf32>
    %cst_60 = arith.constant 1.000000e-01 : f32
    %127 = vector.broadcast %cst_60 : f32 to vector<8x256xf32>
    %128 = arith.mulf %127, %124 : vector<8x256xf32>
    %129 = arith.select %126, %124, %128 : vector<8x256xi1>, vector<8x256xf32>
    %130 = arith.addf %1, %129 : vector<8x256xf32>
    %c0_61 = arith.constant 0 : index
    %c0_62 = arith.constant 0 : index
    %c0_63 = arith.constant 0 : index
    %131 = vector.load %arg8[%c0_61, %c0_62, %c0_63] : memref<1x8x256xf32, #tpu.memory_space<vmem>>, vector<1x8x256xf32>
    %132 = vector.shape_cast %131 : vector<1x8x256xf32> to vector<8x256xf32>
    %133 = vector.shape_cast %130 : vector<8x256xf32> to vector<1x8x256xf32>
    tpu.vector_store %arg8[%c0_61, %c0_62, %c0_63], %133 {strides = array<i32>} : memref<1x8x256xf32, #tpu.memory_space<vmem>>, vector<1x8x256xf32>,
    return
  }
  func.func @transform_0(%arg0: i32) -> (i32, i32, i32) {
    %c0_i32 = arith.constant 0 : i32
    %c0_i32_0 = arith.constant 0 : i32
    %c0_i32_1 = arith.constant 0 : i32
    return %arg0, %c0_i32, %c0_i32_0 : i32, i32, i32
  }
  func.func @transform_1(%arg0: i32) -> (i32, i32) {
    %c0_i32 = arith.constant 0 : i32
    %c0_i32_0 = arith.constant 0 : i32
    %c0_i32_1 = arith.constant 0 : i32
    return %c0_i32, %c0_i32_0 : i32, i32
  }
  func.func @transform_2(%arg0: i32) -> (i32, i32) {
    %c0_i32 = arith.constant 0 : i32
    %c0_i32_0 = arith.constant 0 : i32
    %c0_i32_1 = arith.constant 0 : i32
    return %c0_i32, %c0_i32_0 : i32, i32
  }
  func.func @transform_3(%arg0: i32) -> (i32, i32) {
    %c0_i32 = arith.constant 0 : i32
    %c0_i32_0 = arith.constant 0 : i32
    %c0_i32_1 = arith.constant 0 : i32
    return %c0_i32, %c0_i32_0 : i32, i32
  }
  func.func @transform_4(%arg0: i32) -> (i32, i32, i32) {
    %c0_i32 = arith.constant 0 : i32
    %c0_i32_0 = arith.constant 0 : i32
    %c0_i32_1 = arith.constant 0 : i32
    %c0_i32_2 = arith.constant 0 : i32
    return %c0_i32, %c0_i32_0, %c0_i32_1 : i32, i32, i32
  }
  func.func @transform_5(%arg0: i32) -> (i32, i32) {
    %c0_i32 = arith.constant 0 : i32
    %c0_i32_0 = arith.constant 0 : i32
    %c0_i32_1 = arith.constant 0 : i32
    return %c0_i32, %c0_i32_0 : i32, i32
  }
  func.func @transform_6(%arg0: i32) -> (i32, i32) {
    %c0_i32 = arith.constant 0 : i32
    %c0_i32_0 = arith.constant 0 : i32
    %c0_i32_1 = arith.constant 0 : i32
    return %c0_i32, %c0_i32_0 : i32, i32
  }
  func.func @transform_7(%arg0: i32) -> (i32, i32, i32) {
    %c0_i32 = arith.constant 0 : i32
    %c0_i32_0 = arith.constant 0 : i32
    %c0_i32_1 = arith.constant 0 : i32
    return %arg0, %c0_i32, %c0_i32_0 : i32, i32, i32
  }
}

</mosaic_0001>

<bundles_post_ra>
// kernel: tpu_custom_call.1
= control target key start
LH: loop header
LB: loop body
LE: loop exit
PB: predicated region body
PF: predicated region fallthrough
CT: control target
= control target key end

     0   :  { %12 = vsyncpa [#allocation3], 0  ;;  %s1865_s0 = inlined_call_operand.vmem [shape: f32[2,8,256], index: 0, kind: input, shape index: {}]   ;;  %s1866_s1 = inlined_call_operand.vmem [shape: f32[4,8], index: 1, kind: input, shape index: {}]   ;;  %s1867_s2 = inlined_call_operand.vmem [shape: f32[4,1], index: 2, kind: input, shape index: {}]   ;;  %s1868_s3 = inlined_call_operand.vmem [shape: f32[4,1], index: 3, kind: input, shape index: {}]   ;;  %s1869_s4 = inlined_call_operand.vmem [shape: f32[9,8,4], index: 4, kind: input, shape index: {}]   ;;  %s1870_s5 = inlined_call_operand.vmem [shape: f32[8,1], index: 5, kind: input, shape index: {}]   ;;  %s1871_s6 = inlined_call_operand.vmem [shape: f32[8,1], index: 6, kind: input, shape index: {}]   ;;  %s1872_s7 = inlined_call_operand.hbm [shape: f32[2,8,256], index: 7, kind: output, shape index: {}]  }
   0x1   :  { %14 = vsyncpa [#allocation3 + $0x1], 0  ;;  %s1609_s24 = smov 0   ;;  %s1611_s25 = smov 0  }
   0x2   :  { %s1613_s26 = smov 0   ;;  %s1615_s27 = smov 0  }
   0x3 LB: > { %s1630_s28 = sadd.s32 4294967295, %s1556_s27   ;;  %s1377_s29 = sadd.s32 4294967294, %s1556_s27   ;;  %s1556_s27 = sphi %s1615_s27, %s1886_s27   ;;  %s1552_s26 = sphi %s1613_s26, %s1885_s26   ;;  %s1548_s25 = sphi %s1611_s25, %s1884_s25   ;;  %s1544_s24 = sphi %s1609_s24, %s1883_s24  }
   0x4   : > { %s1634_s30 = sadd.s32 1, %s1556_s27   ;;  %s179_s8 = sadd.s32 1, %s1552_s26 }
   0x5   : > { %s176_s9 = ssub.s32 %s1556_s27, %s1634_s30  ;;  %p189_p0 = scmp.ne.s32.totalorder %s1552_s26, %s1548_s25 }
   0x6   : > { %p177_p1 = scmp.eq.s32.totalorder %s176_s9, 0  ;;  %p190_p2 = scmp.eq.s32.totalorder %s1630_s28, 1 }
   0x7   : > { %p195_p3 = scmp.ne.s32.totalorder %s1548_s25, %s1544_s24  ;;  %p196_p4 = scmp.eq.s32.totalorder %s1377_s29, 1 }
   0x8   : > { %s1645_s10 = scalar_select %p177_p1, %s1552_s26, %s179_s8  }
   0x9   : > { %p1647_p5 = por %p190_p2, %p189_p0  ;;  %p1651_p6 = por %p196_p4, %p195_p3 }
   0xa   : > { %p1380_p7 = scmp.ge.s32.totalorder %s1556_s27, 1  ;;  %p240_p8 = scmp.lt.s32.totalorder %s1556_s27, 3 }
   0xc   : > { %p241_p9 = pnand %p1380_p7, %p240_p8 }
   0xd   : > { %p272_p10 = scmp.lt.s32.totalorder (!%p241_p9), %s1630_s28, 1  ;;  %v1558_v0 = vmov (!%p241_p9), 0.0   ;;  %v1559_v1 = vmov (!%p241_p9), 0   ;;  %v355_v2 = vld [vmem:[%s1867_s2] sm:$0xf] (!%p241_p9)  ;;  %vm280_vm0 = vcmask (!%p241_p9), 64512   ;;  %v377_v22 = vlaneseq (!%p241_p9) }
   0xe   : > { %244 = sbr.rel (%p241_p9) target bundleno = 636 (0x27c), region = 48  ;;  %348 = vmatprep.mubr.f32.mxu0 (!%p241_p9), %v1558_v0  ;;  %1492 = vset.pattern.permute.xlu0 (!%p241_p9), %v1559_v1  ;;  %v363_v3 = vld [vmem:[%s1868_s3] sm:$0xf] (!%p241_p9)  ;;  %vm447_vm3 = vcmask (!%p241_p9), 1043456   ;;  %s1560_s29 = smov (!%p241_p9), 16   ;;  %vm443_vm4 = vcmask (!%p241_p9), 31744  }
   0xf   : > { %358 = vperm.xlu0 (!%p241_p9), %1492, %v355_v2   ;;  %876 = vmatprep.mubr.f32.mxu1 (!%p241_p9), %v1558_v0  ;;  %v279_v6 = vld [vmem:[%s1866_s1] sm:$0xf] (!%p241_p9)  ;;  %s1561_s8 = smov (!%p241_p9), 127   ;;  %s1562_s14 = smov (!%p241_p9), 17   ;;  %v1693_v23 = vand.u32 (!%p241_p9), 127, %v377_v22  ;;  %v1404_v37 = vld [vmem:[%s1869_s4 + $0x28] sm:$0xff] (!%p241_p9) }
  0x10   : > { %1493 = vset.pattern.permute.xlu1 (!%p241_p9), %v1559_v1  ;;  %v1400_v19 = vld [vmem:[%s1869_s4 + $0x20] sm:$0xff] (!%p241_p9)  ;;  %s1564_s16 = smov (!%p241_p9), 15   ;;  %s1565_s17 = smov (!%p241_p9), 112   ;;  %v1385_v43 = vld [vmem:[%s1869_s4 + $0x8] sm:$0xff] (!%p241_p9)  ;;  %v1408_v58 = vld [vmem:[%s1869_s4 + $0x30] sm:$0xff] (!%p241_p9) }
  0x11   : > { %s1567_s19 = smov (!%p241_p9), 111   ;;  %v1277_v20 = vld [vmem:[%s1870_s5] sm:$0xff] (!%p241_p9)  ;;  %v1696_v24 = vadd.s32 (!%p241_p9), 128, %v1693_v23  ;;  %v384_v25 = vand.u32 (!%p241_p9), 15, %v1693_v23  ;;  %vm889_vm5 = vcmp.lt.s32.totalorder (!%p241_p9), %v1693_v23, 127  ;;  %vm432_vm8 = vcmp.lt.s32.totalorder (!%p241_p9), %v1693_v23, 16 }
  0x12   : > { %v1285_v21 = vld [vmem:[%s1871_s6] sm:$0xff] (!%p241_p9)  ;;  %vm404_vm9 = vcmp.ge.s32.totalorder (!%p241_p9), %v1693_v23, 16  ;;  %vm416_vm11 = vcmp.lt.s32.totalorder (!%p241_p9), %v1693_v23, 17  ;;  %vm986_vm15 = vcmp.lt.s32.totalorder (!%p241_p9), %v1693_v23, 113  ;;  %s269_s9 = sand.u32 (!%p241_p9), 1, %s1548_s25  }
  0x13   : > { %366 = vperm.xlu0 (!%p241_p9), %1492, %v363_v3   ;;  %v391_v26 = vand.u32 (!%p241_p9), 15, %v1696_v24  ;;  %vm1701_vm6 = vcmp.ne.s32.totalorder (!%p241_p9), %v384_v25, 15  ;;  %vm1720_vm10 = vcmp.ne.s32.totalorder (!%p241_p9), %v384_v25, 0  ;;  %vm407_vm14 = vcmp.lt.s32.totalorder (!%p241_p9), %v1696_v24, 240  ;;  %v427_v55 = vld [vmem:[%s1869_s4] sm:$0xff] (!%p241_p9)  ;;  %s1381_s13 = sshll.u32 (!%p241_p9), %s269_s9, 4 }
  0x14   : > { %vm419_vm13 = vmand (!%p241_p9), %vm404_vm9, %vm1720_vm10  ;;  %v1416_v22 = vld [vmem:[%s1869_s4 + $0x40] sm:$0xff] (!%p241_p9) }
  0x15   : > { %s273_s15 = scalar_select %p272_p10, %s1630_s28, 1  ;;  %vm1705_vm7 = vcmp.ne.s32.totalorder %v391_v26, 15  ;;  %vm1734_vm12 = vcmp.ne.s32.totalorder %v391_v26, 0 }
  0x17   : > { %s1425_s18 = sshll.u32 %s273_s15, 4  ;;  %s1563_s15 = smov 113  }
  0x18   : > { %s276_s21 = scalar_lea.vmem %s1865_s0, %s1425_s18  ;;  %s1566_s18 = smov 1  }
  0x19   : > { %v1670_v4 = vld [vmem:[%s276_s21 + $0x8] sm:$0xff]  ;;  %v1672_v5 = vld [vmem:[%s276_s21] sm:$0xff]  ;;  %s1568_s21 = smov [#allocation2]  }
  0x1a   : > { %284 = vmatprep.subr.mxu0 %v1670_v4  ;;  %s1498_s22 = sshll.u32 %s1568_s21, 4  ;;  %s1499_s22 = int_to_ptr.vmem [resolvable:$false] %s1498_s22 }
  0x1b   : > { %285 = vmatpush1.msra.mxu0 %v1672_v5  ;;  %s1500_s23 = scalar_lea.vmem %s1499_s22, 512 }
  0x1c   : > { %1384 = vmatmul.mubr.msk.f32.vlgmr.msra.gmra.mrb[0].mxu0 %vm280_vm0, %v279_v6  ;;  %vm990_vm0 = vmand %vm407_vm14, %vm1734_vm12  ;;  %v1392_v6 = vld [vmem:[%s1869_s4 + $0x10] sm:$0xff] }
  0x1d   : > { %518 = vmatprep.mubr.f32.mxu0 %v1558_v0 }
  0x8e   : > { %v359_v7 = vpop.permute.xlu0 %358 }
  0x92   : > { %v367_v11 = vpop.permute.xlu0 %366 }
  0xef   : > { %v350_v8 = vpop.f32.mrb[0].mxu0 }
  0xf0   : > { %v361_v9 = vmul.f32 %v359_v7, %v350_v8  ;;  %v352_v10 = vpop.f32.mrb[1].mxu0 }
  0xf1   : > { %v362_v12 = vmul.f32 %v359_v7, %v352_v10 }
  0xf2   : > { %v369_v13 = vadd.f32 %v367_v11, %v361_v9  ;;  %v1412_v9 = vld [vmem:[%s1869_s4 + $0x38] sm:$0xff] }
  0xf3   : > { %v370_v14 = vadd.f32 %v367_v11, %v362_v12 }
  0xf4   : > { %vm371_vm1 = vcmp.gt.f32.partialorder %v369_v13, 0.0  ;;  %v373_v15 = vmul.f32 0.1, %v369_v13 }
  0xf5   : > { %vm372_vm2 = vcmp.gt.f32.partialorder %v370_v14, 0.0  ;;  %v374_v16 = vmul.f32 0.1, %v370_v14 }
  0xf6   : > { %v375_v17 = vsel %vm371_vm1, %v369_v13, %v373_v15  ;;  %vm609_vm1 = vcmp.lt.s32.totalorder %v1693_v23, 15 }
  0xf7   : > { %v376_v18 = vsel %vm372_vm2, %v370_v14, %v374_v16  ;;  %428 = vrot.lane.b32.xlu0 %v375_v17, %s1560_s29  ;;  %885 = vrot.lane.b32.xlu1 %v375_v17, %s1561_s8  ;;  %vm612_vm2 = vmand %vm404_vm9, %vm1701_vm6 }
  0xf8   : > { %1401 = vmatprep.subr.msk.mxu1 %vm447_vm3, %v376_v18 }
  0xf9   : > { %1402 = vmatpush1.msk.msra.mxu1 %vm447_vm3, %v375_v17 }
  0xfa   : > { %1403 = vmatmul.mubr.msk.f32.vlgmr.msra.gmra.mrb[0].mxu1 %vm443_vm4, %v1400_v19 }
  0xfb   : > { %412 = vrot.lane.b32.xlu0 %v375_v17, %s1562_s14  ;;  %887 = vrot.lane.b32.xlu1 %v376_v18, %s1561_s8 }
  0xfc   : > { %973 = vmatprep.mubr.f32.mxu1 %v1558_v0 }
  0xff   : > { %982 = vrot.lane.b32.xlu0 %v375_v17, %s1563_s15  ;;  %430 = vrot.lane.b32.xlu1 %v376_v18, %s1560_s29 }
 0x103   : > { %605 = vrot.lane.b32.xlu0 %v375_v17, %s1564_s16  ;;  %414 = vrot.lane.b32.xlu1 %v376_v18, %s1562_s14  ;;  %s1426_s14 = sshll.u32 %s1630_s28, 8  ;;  %s1304_s28 = scalar_lea.sflag [#allocation3], %s269_s9 }
 0x107   : > { %1081 = vrot.lane.b32.xlu0 %v375_v17, %s1565_s17  ;;  %984 = vrot.lane.b32.xlu1 %v376_v18, %s1563_s15  ;;  %s271_s15 = scalar_lea.vmem [#allocation2], %s1381_s13 }
 0x10b   : > { %704 = vrot.lane.b32.xlu0 %v375_v17, %s1566_s18  ;;  %607 = vrot.lane.b32.xlu1 %v376_v18, %s1564_s16  ;;  %s1318_s16 = sshll.u32 %s271_s15, 4  ;;  %s1825_s16 = int_to_ptr.vmem [resolvable:$true] %s1318_s16 }
 0x10c   : > { %s1494_s20 = scalar_lea.vmem %s1825_s16, 256  ;;  %p1501_p0 = scmp.lt.s32.totalorder %s1825_s16, %s1499_s22 }
 0x10d   : > { %p1495_p11 = scmp.ne.s32.totalorder %s1825_s16, %s1494_s20  ;;  %p1502_p1 = scmp.lt.s32.totalorder %s1500_s23, %s1494_s20 }
 0x10f   : > { %1178 = vrot.lane.b32.xlu0 %v375_v17, %s1567_s19  ;;  %1083 = vrot.lane.b32.xlu1 %v376_v18, %s1565_s17  ;;  %p1496_p12 = pnand %p1495_p11, %p1647_p5  ;;  %p1503_p2 = por %p1502_p1, %p1501_p0 }
 0x111   : > { %p1497_p13 = pneg %p1496_p12 }
 0x113   : > { %1280 = vperm.xlu0 %1492, %v1277_v20   ;;  %706 = vrot.lane.b32.xlu1 %v376_v18, %s1566_s18  ;;  %v1396_v20 = vld [vmem:[%s1869_s4 + $0x18] sm:$0xff]  ;;  %p1504_p3 = pnand %p1503_p2, %p1497_p13 }
 0x117   : > { %1180 = vrot.lane.b32.xlu1 %v376_v18, %s1567_s19  ;;  %s1823_s19 = scalar_lea.hbm %s1872_s7, %s1426_s14 }
 0x11b   : > { %1288 = vperm.xlu1 %1493, %v1285_v21  }
 0x169   : > { %v429_v27 = vpop.permute.xlu0 %428  ;;  %v886_v28 = vpop.permute.xlu1 %885 }
 0x16d   : > { %v413_v31 = vpop.permute.xlu0 %412  ;;  %v888_v32 = vpop.permute.xlu1 %887 }
 0x16e   : > { %v890_v33 = vsel %vm889_vm5, %v886_v28, %v888_v32  ;;  %v891_v34 = vsel %vm889_vm5, %v888_v32, %v886_v28  ;;  %vm1085_vm5 = vcmp.lt.s32.totalorder %v1693_v23, 112 }
 0x16f   : > { %v896_v35 = vsel %vm1701_vm6, %v890_v33, 0.0  ;;  %v897_v36 = vsel %vm1705_vm7, %v891_v34, 0.0 }
 0x170   : > { %1405 = vmatprep.subr.msk.mxu1 %vm447_vm3, %v897_v36 }
 0x171   : > { %v983_v38 = vpop.permute.xlu0 %982  ;;  %v431_v39 = vpop.permute.xlu1 %430  ;;  %1406 = vmatpush1.msk.msra.mxu1 %vm447_vm3, %v896_v35 }
 0x172   : > { %v433_v41 = vsel %vm432_vm8, %v429_v27, %v431_v39  ;;  %v434_v42 = vsel %vm432_vm8, %v431_v39, %v429_v27  ;;  %1407 = vmatmul.mubr.msk.f32.vlgmr.msra.gmra.mrb[0].mxu1 %vm443_vm4, %v1404_v37  ;;  %vm708_vm8 = vcmp.lt.s32.totalorder %v1693_v23, 1 }
 0x173   : > { %v439_v44 = vsel %vm404_vm9, %v434_v42, 0.0  ;;  %1386 = vmatprep.subr.msk.mxu0 %vm447_vm3, %v433_v41  ;;  %1072 = vmatprep.mubr.f32.mxu1 %v1558_v0  ;;  %vm1182_vm9 = vcmp.lt.s32.totalorder %v1693_v23, 111 }
 0x174   : > { %1387 = vmatpush1.msk.msra.mxu0 %vm447_vm3, %v439_v44 }
 0x175   : > { %1388 = vmatmul.mubr.msk.f32.vlgmr.msra.gmra.mrb[2].mxu0 %vm443_vm4, %v1385_v43  ;;  %v415_v46 = vpop.permute.xlu1 %414  ;;  %v606_v49 = vpop.permute.xlu0 %605 }
 0x176   : > { %v417_v47 = vsel %vm416_vm11, %v413_v31, %v415_v46  ;;  %v418_v48 = vsel %vm416_vm11, %v415_v46, %v413_v31  ;;  %598 = vmatprep.mubr.f32.mxu0 %v1558_v0  ;;  %vm1186_vm11 = vmand %vm407_vm14, %vm1705_vm7 }
 0x177   : > { %v425_v50 = vsel %vm419_vm13, %v418_v48, 0.0  ;;  %v426_v51 = vsel %vm1734_vm12, %v417_v47, 0.0 }
 0x178   : > { %1389 = vmatprep.subr.msk.mxu0 %vm447_vm3, %v426_v51 }
 0x179   : > { %1390 = vmatpush1.msk.msra.mxu0 %vm447_vm3, %v425_v50  ;;  %v985_v52 = vpop.permute.xlu1 %984  ;;  %v1082_v59 = vpop.permute.xlu0 %1081 }
 0x17a   : > { %v987_v53 = vsel %vm986_vm15, %v983_v38, %v985_v52  ;;  %v988_v54 = vsel %vm986_vm15, %v985_v52, %v983_v38 }
 0x17b   : > { %v995_v56 = vsel %vm1720_vm10, %v987_v53, 0.0  ;;  %v996_v57 = vsel %vm990_vm0, %v988_v54, 0.0 }
 0x17c   : > { %1409 = vmatprep.subr.msk.mxu1 %vm447_vm3, %v996_v57 }
 0x17d   : > { %1391 = vmatmul.mubr.msk.f32.vlgmr.msra.gmra.mrb[2].mxu0 %vm443_vm4, %v427_v55  ;;  %v608_v60 = vpop.permute.xlu1 %607  ;;  %1410 = vmatpush1.msk.msra.mxu1 %vm447_vm3, %v995_v56  ;;  %v705_v7 = vpop.permute.xlu0 %704 }
 0x17e   : > { %v610_v61 = vsel %vm609_vm1, %v606_v49, %v608_v60  ;;  %v611_v62 = vsel %vm609_vm1, %v608_v60, %v606_v49  ;;  %1411 = vmatmul.mubr.msk.f32.vlgmr.msra.gmra.mrb[0].mxu1 %vm443_vm4, %v1408_v58  ;;  %695 = vmatprep.mubr.f32.mxu0 %v1558_v0 }
 0x17f   : > { %v618_v63 = vsel %vm612_vm2, %v611_v62, 0.0  ;;  %v619_v1 = vsel %vm1705_vm7, %v610_v61, 0.0  ;;  %1169 = vmatprep.mubr.f32.mxu1 %v1558_v0 }
 0x180   : > { %1393 = vmatprep.subr.msk.mxu0 %vm447_vm3, %v619_v1 }
 0x181   : > { %1394 = vmatpush1.msk.msra.mxu0 %vm447_vm3, %v618_v63  ;;  %v1084_v2 = vpop.permute.xlu1 %1083  ;;  %v1179_v16 = vpop.permute.xlu0 %1178 }
 0x182   : > { %v1087_v3 = vsel %vm1085_vm5, %v1084_v2, %v1082_v59  ;;  %v1086_v10 = vsel %vm1085_vm5, %v1082_v59, %v1084_v2 }
 0x183   : > { %v1093_v8 = vsel %vm407_vm14, %v1087_v3, 0.0 }
 0x184   : > { %1413 = vmatprep.subr.msk.mxu1 %vm447_vm3, %v1093_v8 }
 0x185   : > { %1395 = vmatmul.mubr.msk.f32.vlgmr.msra.gmra.mrb[2].mxu0 %vm443_vm4, %v1392_v6  ;;  %v707_v11 = vpop.permute.xlu1 %706  ;;  %1414 = vmatpush1.msk.msra.mxu1 %vm447_vm3, %v1086_v10 }
 0x186   : > { %v709_v12 = vsel %vm708_vm8, %v705_v7, %v707_v11  ;;  %v710_v13 = vsel %vm708_vm8, %v707_v11, %v705_v7  ;;  %1415 = vmatmul.mubr.msk.f32.vlgmr.msra.gmra.mrb[0].mxu1 %vm443_vm4, %v1412_v9  ;;  %792 = vmatprep.mubr.f32.mxu0 %v1558_v0 }
 0x187   : > { %v715_v14 = vsel %vm1720_vm10, %v710_v13, 0.0  ;;  %v716_v15 = vsel %vm1734_vm12, %v709_v12, 0.0  ;;  %1268 = vmatprep.mubr.f32.mxu1 %v1558_v0 }
 0x188   : > { %1397 = vmatprep.subr.msk.mxu0 %vm447_vm3, %v716_v15 }
 0x189   : > { %1398 = vmatpush1.msk.msra.mxu0 %vm447_vm3, %v715_v14  ;;  %v1181_v17 = vpop.permute.xlu1 %1180 }
 0x18a   : > { %v1183_v18 = vsel %vm1182_vm9, %v1179_v16, %v1181_v17  ;;  %v1184_v19 = vsel %vm1182_vm9, %v1181_v17, %v1179_v16 }
 0x18b   : > { %v1191_v0 = vsel %vm1701_vm6, %v1183_v18, 0.0  ;;  %v1192_v21 = vsel %vm1186_vm11, %v1184_v19, 0.0 }
 0x18c   : > { %1417 = vmatprep.subr.msk.mxu1 %vm447_vm3, %v1192_v21 }
 0x18d   : > { %1399 = vmatmul.mubr.msk.f32.vlgmr.msra.gmra.mrb[2].mxu0 %vm443_vm4, %v1396_v20  ;;  %1418 = vmatpush1.msk.msra.mxu1 %vm447_vm3, %v1191_v0 }
 0x18e   : > { %1419 = vmatmul.mubr.msk.f32.vlgmr.msra.gmra.mrb[0].mxu1 %vm443_vm4, %v1416_v22 }
 0x192   : > { %v1281_v28 = vpop.permute.xlu0 %1280 }
 0x19a   : > { %v1289_v30 = vpop.permute.xlu1 %1288 }
 0x260   : > { %v794_v23 = vpop.f32.mrb[2].mxu0 }
 0x261   : > { %v796_v24 = vpop.f32.mrb[3].mxu0  ;;  %v1270_v25 = vpop.f32.mrb[0].mxu1 }
 0x262   : > { %v1427_v26 = vadd.f32 %v1270_v25, %v794_v23  ;;  %v1272_v27 = vpop.f32.mrb[1].mxu1 }
 0x263   : > { %v1428_v29 = vadd.f32 %v1272_v27, %v796_v24 }
 0x264   : > { %v1283_v31 = vmul.f32 %v1427_v26, %v1281_v28 }
 0x265   : > { %v1284_v32 = vmul.f32 %v1428_v29, %v1281_v28 }
 0x266   : > { %v1291_v33 = vadd.f32 %v1289_v30, %v1283_v31 }
 0x267   : > { %v1292_v34 = vadd.f32 %v1289_v30, %v1284_v32 }
 0x268   : > { %vm1293_vm6 = vcmp.gt.f32.partialorder %v1291_v33, 0.0  ;;  %v1295_v35 = vmul.f32 0.1, %v1291_v33 }
 0x269   : > { %vm1294_vm3 = vcmp.gt.f32.partialorder %v1292_v34, 0.0  ;;  %v1296_v36 = vmul.f32 0.1, %v1292_v34 }
 0x26a   : > { %v1297_v37 = vsel %vm1293_vm6, %v1291_v33, %v1295_v35 }
 0x26b   : > { %v1298_v38 = vsel %vm1294_vm3, %v1292_v34, %v1296_v36  ;;  %v1299_v39 = vadd.f32 %v1297_v37, %v1672_v5 }
 0x26c   : > { %v1300_v40 = vadd.f32 %v1298_v38, %v1670_v4 }
 0x26d   : > { %1301 = vst [vmem:[%s271_s15] sm:$0xff] %v1299_v39 }
 0x26e   : > { %1302 = vst [vmem:[%s271_s15 + $0x8] sm:$0xff] %v1300_v40 }
 0x26f   : > { %1507 = shalt.err (!%p1504_p3)
}
 0x270   : > { %s1508_s29 = scalar_lea.hbm %s1823_s19, 256  ;;  %s1512_s13 = scalar_lea.hbm %s1872_s7, 512 }
 0x271   : > { %p1509_p4 = scmp.ne.s32.totalorder %s1823_s19, %s1508_s29  ;;  %p1513_p9 = scmp.lt.u32.totalorder %s1823_s19, %s1872_s7 }
 0x272   : > { %p1514_p10 = scmp.lt.u32.totalorder %s1512_s13, %s1508_s29  ;;  %p1516_p12 = scmp.lt.u32.totalorder %s1508_s29, %s1823_s19 }
 0x273   : > { %p1510_p7 = pnand %p1509_p4, %p1647_p5 }
 0x274   : > { %p1515_p11 = por %p1514_p10, %p1513_p9 }
 0x275   : > { %p1511_p8 = pneg %p1510_p7 }
 0x276   : > { %p1517_p13 = por %p1516_p12, %p1515_p11 }
 0x278   : > { %p1518_p0 = pnand %p1517_p13, %p1511_p8 }
 0x27a   : > { %1521 = shalt.err (!%p1518_p0)
}
 0x27b   : > { %1443 = dma.vmem_to_hbm [thread:$0]  (%p1647_p5), %s1825_s16, 256, %s1823_s19, %s1304_s28  }
 0x27c PF: > { %p1449_p1 = scmp.ge.s32.totalorder %s1556_s27, 2  ;;  %s1330_s17 = sand.u32 1, %s1544_s24  }
 0x27d   : > { %s1331_s18 = scalar_lea.sflag [#allocation3], %s1330_s17 }
 0x27e   : > { %p1446_p2 = pnand %p1449_p1, %p1651_p6 }
 0x280   : > { %1539 = dma.done.wait (!%p1446_p2), %s1331_s18, 256  }
 0x281   : > { %1541 = vsyncadd (!%p1446_p2), %s1331_s18, 4294967040  ;;  %p17_p3 = scmp.ge.s32.totalorder %s1634_s30, 4   ;;  %s1883_s24 = smov %s1548_s25 }
 0x282   : > { %s1884_s25 = smov %s1552_s26  ;;  %s1885_s26 = smov %s1645_s10 }
 0x283   : > { %s1886_s27 = smov %s1634_s30  ;;  %19 = sbr.rel (!%p17_p3) target bundleno = 3 (0x3), region = 91 }
 0x28a   :  { %1336 = vsyncpa [#allocation3], 1 }
 0x28b   :  { %1338 = vsyncpa [#allocation3 + $0x1], 1 }

</bundles_post_ra>
